<compile_context>
chip_gen: v5e
topology: v5e:2x2
jax: 0.10.0
libtpu: 0.0.40
codegen_flags: <defaults>
</compile_context>

<pallas_src>
import functools

import jax
import jax.numpy as jnp
from jax.experimental import pallas as pl
from jax.experimental.pallas import tpu as pltpu


def _mlp_kernel(e_ref, t_ref, ab_ref, x_ref, o_ref, *, hidden):
    # e_ref, t_ref: (hidden,) f32 in SMEM; ab_ref: (2,) f32 in SMEM
    #   ab_ref[0] = 0.5 * sum_j w1_j*w2_j          (linear coefficient)
    #   ab_ref[1] = 0.5 * sum_j w2_j*b1_j + b2 (+ folded degenerate units)
    # x_ref / o_ref: (TM, LANES) f32 lane-dense tiles of the flattened batch.
    x = x_ref[...]

    # Hoist all SMEM scalar reads once per tile (not per (8,128) strip).
    es = [e_ref[j] for j in range(hidden)]
    ts = [t_ref[j] for j in range(hidden)]
    half_a = ab_ref[0]
    const = ab_ref[1]

    # Static 20x unroll, round-robined over 4 partial accumulators for ILP.
    n_acc = min(4, hidden)
    accs = [None] * n_acc
    for j in range(hidden):
        term = es[j] * jnp.abs(x + ts[j])      # add, abs, mul (+ add below)
        k = j % n_acc
        accs[k] = term if accs[k] is None else accs[k] + term

    # Pairwise combine the partial accumulators.
    while len(accs) > 1:
        nxt = []
        for i in range(0, len(accs), 2):
            if i + 1 < len(accs):
                nxt.append(accs[i] + accs[i + 1])
            else:
                nxt.append(accs[i])
        accs = nxt

    lin = x * half_a + const                   # one FMA-equivalent per tile
    o_ref[...] = (accs[0] + lin).astype(o_ref.dtype)


def _round_up(a, b):
    return ((a + b - 1) // b) * b


def net_forward(x, w1, b1, w2, b2, *, max_lanes=1024, max_rows_per_tile=512,
                target_blocks=4):
    """x: (N, 1) f32 (PyTorch Linear convention). Returns (N, 1) f32.

    w1: (1, H), b1: (H,), w2: (H, 1), b2: (1,)  (weights stored as (in, out)).
    """
    n = x.shape[0]
    hidden = w1.shape[-1]

    # ---- parameter preprocessing (tiny, done once in the wrapper) ----------
    w1v = w1.reshape(hidden).astype(jnp.float32)
    b1v = b1.reshape(hidden).astype(jnp.float32)
    w2v = w2.reshape(hidden).astype(jnp.float32)
    b2s = b2.reshape(()).astype(jnp.float32)

    eps = jnp.float32(1e-6)
    safe = jnp.abs(w1v) >= eps                      # guard t = b1/w1
    a_sum = jnp.sum(jnp.where(safe, w1v * w2v, 0.0))
    c_sum = jnp.sum(jnp.where(safe, w2v * b1v, 0.0))
    # units with w1 ~ 0 contribute (almost exactly) w2*relu(b1): fold to const
    deg = jnp.sum(jnp.where(safe, 0.0, w2v * jnp.maximum(b1v, 0.0)))
    e = jnp.where(safe, 0.5 * w2v * jnp.abs(w1v), 0.0).astype(jnp.float32)
    t = jnp.where(safe, b1v / jnp.where(safe, w1v, 1.0), 0.0).astype(jnp.float32)
    ab = jnp.stack([0.5 * a_sum, 0.5 * c_sum + deg + b2s]).astype(jnp.float32)

    # ---- lane-dense batch re-layout ----------------------------------------
    # Flatten the (N, 1) batch and view it as (rows, lanes), lanes a multiple
    # of 128 (full-width vst).  Prefer a lane width that divides N exactly so
    # the reshape is zero-copy (no pad / output-slice HBM passes).
    lanes = max_lanes
    while lanes > 128 and n < lanes:
        lanes //= 2
    for cand in (1024, 512, 256, 128):
        if cand <= lanes and n % cand == 0:
            lanes = cand
            break
    rows = pl.cdiv(n, lanes)
    total = rows * lanes

    # Tile rows: multiple of 8, capped for VMEM, and aim for >= target_blocks
    # grid steps so megacore ("parallel") and pipelining have work to split.
    if rows < 8:
        tm = rows                                   # block dim == full dim
    else:
        tm = max(8, _round_up(pl.cdiv(rows, target_blocks), 8))
        tm = min(tm, max_rows_per_tile, (rows // 8) * 8)
    grid = (pl.cdiv(rows, tm),)

    xf = x.reshape(-1).astype(jnp.float32)
    padded = total != n
    if padded:
        # TODO(synk): ragged batches still pay one extra HBM pass here; aligned
        # batches (n % lanes == 0) take the zero-copy path below.
        xf = jnp.pad(xf, (0, total - n))
    x2d = xf.reshape(rows, lanes)

    kernel = functools.partial(_mlp_kernel, hidden=hidden)
    smem_spec = pl.BlockSpec(memory_space=pltpu.MemorySpace.SMEM)

    y2d = pl.pallas_call(
        kernel,
        out_shape=jax.ShapeDtypeStruct((rows, lanes), jnp.float32),
        grid_spec=pl.GridSpec(
            grid=grid,
            in_specs=[
                smem_spec,                                    # e  (resident)
                smem_spec,                                    # t  (resident)
                smem_spec,                                    # [0.5*A, const]
                pl.BlockSpec((tm, lanes), lambda i: (i, 0)),  # x tile
            ],
            out_specs=pl.BlockSpec((tm, lanes), lambda i: (i, 0)),
        ),
        compiler_params=pltpu.CompilerParams(
            dimension_semantics=("parallel",)),
    )(e, t, ab, x2d)

    if padded:
        return y2d.reshape(-1)[:n].reshape(n, 1)
    return y2d.reshape(n, 1)


def init_params(key, in_dim=1, hidden=20, out_dim=1):
    """Deterministic init mimicking torch.nn.Linear defaults:
    U(-1/sqrt(fan_in), 1/sqrt(fan_in)) for both weights and biases."""
    k1, k2, k3, k4 = jax.random.split(key, 4)
    bound1 = 1.0 / jnp.sqrt(jnp.float32(in_dim))
    bound2 = 1.0 / jnp.sqrt(jnp.float32(hidden))
    # Stored as (in, out) = transpose of PyTorch's (out, in) weight layout.
    w1 = jax.random.uniform(k1, (in_dim, hidden), jnp.float32, -bound1, bound1)
    b1 = jax.random.uniform(k2, (hidden,), jnp.float32, -bound1, bound1)
    w2 = jax.random.uniform(k3, (hidden, out_dim), jnp.float32, -bound2, bound2)
    b2 = jax.random.uniform(k4, (out_dim,), jnp.float32, -bound2, bound2)
    return w1, b1, w2, b2


if __name__ == "__main__":
    key = jax.random.PRNGKey(0)
    w1, b1, w2, b2 = init_params(key)

    def reference(x):
        h = jnp.maximum(x @ w1 + b1.reshape(1, -1), 0.0)
        return h @ w2 + b2.reshape(1, -1)

    # N=1000 matches the PyTorch script (ragged / padded path); N=1024
    # exercises the zero-copy aligned fast path.
    for n in (1000, 1024):
        x = jnp.linspace(-1.0, 1.0, n, dtype=jnp.float32).reshape(n, 1)
        y = jax.block_until_ready(net_forward(x, w1, b1, w2, b2))
        y_ref = reference(x)
        assert y.shape == (n, 1)
        assert jnp.allclose(y, y_ref, atol=1e-5, rtol=1e-5), (
            n, float(jnp.max(jnp.abs(y - y_ref))))

    print("KERNEL_OK")
</pallas_src>

<mosaic_0001>
module attributes {stable_mosaic.version = 11 : i64} {
  func.func @_mlp_kernel(%arg0: i32, %arg1: memref<20xf32, #tpu.memory_space<smem>>, %arg2: memref<20xf32, #tpu.memory_space<smem>>, %arg3: memref<2xf32, #tpu.memory_space<smem>>, %arg4: memref<2x512xf32, #tpu.memory_space<vmem>>, %arg5: memref<2x512xf32, #tpu.memory_space<vmem>>) attributes {dimension_semantics = [#tpu.dimension_semantics<parallel>], iteration_bounds = array<i64: 1>, scalar_prefetch = 0 : i64, scratch_operands = 0 : i64, tpu.core_type = #tpu.core_type<tc>, window_params = [{transform_indices = @transform_0, window_bounds = array<i64: 20>}, {transform_indices = @transform_1, window_bounds = array<i64: 20>}, {transform_indices = @transform_2, window_bounds = array<i64: 2>}, {transform_indices = @transform_3, window_bounds = array<i64: 2, 512>}, {transform_indices = @transform_4, window_bounds = array<i64: 2, 512>}]} {
    %c0 = arith.constant 0 : index
    %c0_0 = arith.constant 0 : index
    %0 = vector.load %arg4[%c0, %c0_0] : memref<2x512xf32, #tpu.memory_space<vmem>>, vector<2x512xf32>
    %c0_1 = arith.constant 0 : index
    %1 = memref.load %arg1[%c0_1] : memref<20xf32, #tpu.memory_space<smem>>
    %c1 = arith.constant 1 : index
    %2 = memref.load %arg1[%c1] : memref<20xf32, #tpu.memory_space<smem>>
    %c2 = arith.constant 2 : index
    %3 = memref.load %arg1[%c2] : memref<20xf32, #tpu.memory_space<smem>>
    %c3 = arith.constant 3 : index
    %4 = memref.load %arg1[%c3] : memref<20xf32, #tpu.memory_space<smem>>
    %c4 = arith.constant 4 : index
    %5 = memref.load %arg1[%c4] : memref<20xf32, #tpu.memory_space<smem>>
    %c5 = arith.constant 5 : index
    %6 = memref.load %arg1[%c5] : memref<20xf32, #tpu.memory_space<smem>>
    %c6 = arith.constant 6 : index
    %7 = memref.load %arg1[%c6] : memref<20xf32, #tpu.memory_space<smem>>
    %c7 = arith.constant 7 : index
    %8 = memref.load %arg1[%c7] : memref<20xf32, #tpu.memory_space<smem>>
    %c8 = arith.constant 8 : index
    %9 = memref.load %arg1[%c8] : memref<20xf32, #tpu.memory_space<smem>>
    %c9 = arith.constant 9 : index
    %10 = memref.load %arg1[%c9] : memref<20xf32, #tpu.memory_space<smem>>
    %c10 = arith.constant 10 : index
    %11 = memref.load %arg1[%c10] : memref<20xf32, #tpu.memory_space<smem>>
    %c11 = arith.constant 11 : index
    %12 = memref.load %arg1[%c11] : memref<20xf32, #tpu.memory_space<smem>>
    %c12 = arith.constant 12 : index
    %13 = memref.load %arg1[%c12] : memref<20xf32, #tpu.memory_space<smem>>
    %c13 = arith.constant 13 : index
    %14 = memref.load %arg1[%c13] : memref<20xf32, #tpu.memory_space<smem>>
    %c14 = arith.constant 14 : index
    %15 = memref.load %arg1[%c14] : memref<20xf32, #tpu.memory_space<smem>>
    %c15 = arith.constant 15 : index
    %16 = memref.load %arg1[%c15] : memref<20xf32, #tpu.memory_space<smem>>
    %c16 = arith.constant 16 : index
    %17 = memref.load %arg1[%c16] : memref<20xf32, #tpu.memory_space<smem>>
    %c17 = arith.constant 17 : index
    %18 = memref.load %arg1[%c17] : memref<20xf32, #tpu.memory_space<smem>>
    %c18 = arith.constant 18 : index
    %19 = memref.load %arg1[%c18] : memref<20xf32, #tpu.memory_space<smem>>
    %c19 = arith.constant 19 : index
    %20 = memref.load %arg1[%c19] : memref<20xf32, #tpu.memory_space<smem>>
    %c0_2 = arith.constant 0 : index
    %21 = memref.load %arg2[%c0_2] : memref<20xf32, #tpu.memory_space<smem>>
    %c1_3 = arith.constant 1 : index
    %22 = memref.load %arg2[%c1_3] : memref<20xf32, #tpu.memory_space<smem>>
    %c2_4 = arith.constant 2 : index
    %23 = memref.load %arg2[%c2_4] : memref<20xf32, #tpu.memory_space<smem>>
    %c3_5 = arith.constant 3 : index
    %24 = memref.load %arg2[%c3_5] : memref<20xf32, #tpu.memory_space<smem>>
    %c4_6 = arith.constant 4 : index
    %25 = memref.load %arg2[%c4_6] : memref<20xf32, #tpu.memory_space<smem>>
    %c5_7 = arith.constant 5 : index
    %26 = memref.load %arg2[%c5_7] : memref<20xf32, #tpu.memory_space<smem>>
    %c6_8 = arith.constant 6 : index
    %27 = memref.load %arg2[%c6_8] : memref<20xf32, #tpu.memory_space<smem>>
    %c7_9 = arith.constant 7 : index
    %28 = memref.load %arg2[%c7_9] : memref<20xf32, #tpu.memory_space<smem>>
    %c8_10 = arith.constant 8 : index
    %29 = memref.load %arg2[%c8_10] : memref<20xf32, #tpu.memory_space<smem>>
    %c9_11 = arith.constant 9 : index
    %30 = memref.load %arg2[%c9_11] : memref<20xf32, #tpu.memory_space<smem>>
    %c10_12 = arith.constant 10 : index
    %31 = memref.load %arg2[%c10_12] : memref<20xf32, #tpu.memory_space<smem>>
    %c11_13 = arith.constant 11 : index
    %32 = memref.load %arg2[%c11_13] : memref<20xf32, #tpu.memory_space<smem>>
    %c12_14 = arith.constant 12 : index
    %33 = memref.load %arg2[%c12_14] : memref<20xf32, #tpu.memory_space<smem>>
    %c13_15 = arith.constant 13 : index
    %34 = memref.load %arg2[%c13_15] : memref<20xf32, #tpu.memory_space<smem>>
    %c14_16 = arith.constant 14 : index
    %35 = memref.load %arg2[%c14_16] : memref<20xf32, #tpu.memory_space<smem>>
    %c15_17 = arith.constant 15 : index
    %36 = memref.load %arg2[%c15_17] : memref<20xf32, #tpu.memory_space<smem>>
    %c16_18 = arith.constant 16 : index
    %37 = memref.load %arg2[%c16_18] : memref<20xf32, #tpu.memory_space<smem>>
    %c17_19 = arith.constant 17 : index
    %38 = memref.load %arg2[%c17_19] : memref<20xf32, #tpu.memory_space<smem>>
    %c18_20 = arith.constant 18 : index
    %39 = memref.load %arg2[%c18_20] : memref<20xf32, #tpu.memory_space<smem>>
    %c19_21 = arith.constant 19 : index
    %40 = memref.load %arg2[%c19_21] : memref<20xf32, #tpu.memory_space<smem>>
    %c0_22 = arith.constant 0 : index
    %41 = memref.load %arg3[%c0_22] : memref<2xf32, #tpu.memory_space<smem>>
    %c1_23 = arith.constant 1 : index
    %42 = memref.load %arg3[%c1_23] : memref<2xf32, #tpu.memory_space<smem>>
    %43 = vector.broadcast %21 : f32 to vector<2x512xf32>
    %44 = arith.addf %0, %43 : vector<2x512xf32>
    %45 = math.absf %44 : vector<2x512xf32>
    %46 = vector.broadcast %1 : f32 to vector<2x512xf32>
    %47 = arith.mulf %46, %45 : vector<2x512xf32>
    %48 = vector.broadcast %22 : f32 to vector<2x512xf32>
    %49 = arith.addf %0, %48 : vector<2x512xf32>
    %50 = math.absf %49 : vector<2x512xf32>
    %51 = vector.broadcast %2 : f32 to vector<2x512xf32>
    %52 = arith.mulf %51, %50 : vector<2x512xf32>
    %53 = vector.broadcast %23 : f32 to vector<2x512xf32>
    %54 = arith.addf %0, %53 : vector<2x512xf32>
    %55 = math.absf %54 : vector<2x512xf32>
    %56 = vector.broadcast %3 : f32 to vector<2x512xf32>
    %57 = arith.mulf %56, %55 : vector<2x512xf32>
    %58 = vector.broadcast %24 : f32 to vector<2x512xf32>
    %59 = arith.addf %0, %58 : vector<2x512xf32>
    %60 = math.absf %59 : vector<2x512xf32>
    %61 = vector.broadcast %4 : f32 to vector<2x512xf32>
    %62 = arith.mulf %61, %60 : vector<2x512xf32>
    %63 = vector.broadcast %25 : f32 to vector<2x512xf32>
    %64 = arith.addf %0, %63 : vector<2x512xf32>
    %65 = math.absf %64 : vector<2x512xf32>
    %66 = vector.broadcast %5 : f32 to vector<2x512xf32>
    %67 = arith.mulf %66, %65 : vector<2x512xf32>
    %68 = arith.addf %47, %67 : vector<2x512xf32>
    %69 = vector.broadcast %26 : f32 to vector<2x512xf32>
    %70 = arith.addf %0, %69 : vector<2x512xf32>
    %71 = math.absf %70 : vector<2x512xf32>
    %72 = vector.broadcast %6 : f32 to vector<2x512xf32>
    %73 = arith.mulf %72, %71 : vector<2x512xf32>
    %74 = arith.addf %52, %73 : vector<2x512xf32>
    %75 = vector.broadcast %27 : f32 to vector<2x512xf32>
    %76 = arith.addf %0, %75 : vector<2x512xf32>
    %77 = math.absf %76 : vector<2x512xf32>
    %78 = vector.broadcast %7 : f32 to vector<2x512xf32>
    %79 = arith.mulf %78, %77 : vector<2x512xf32>
    %80 = arith.addf %57, %79 : vector<2x512xf32>
    %81 = vector.broadcast %28 : f32 to vector<2x512xf32>
    %82 = arith.addf %0, %81 : vector<2x512xf32>
    %83 = math.absf %82 : vector<2x512xf32>
    %84 = vector.broadcast %8 : f32 to vector<2x512xf32>
    %85 = arith.mulf %84, %83 : vector<2x512xf32>
    %86 = arith.addf %62, %85 : vector<2x512xf32>
    %87 = vector.broadcast %29 : f32 to vector<2x512xf32>
    %88 = arith.addf %0, %87 : vector<2x512xf32>
    %89 = math.absf %88 : vector<2x512xf32>
    %90 = vector.broadcast %9 : f32 to vector<2x512xf32>
    %91 = arith.mulf %90, %89 : vector<2x512xf32>
    %92 = arith.addf %68, %91 : vector<2x512xf32>
    %93 = vector.broadcast %30 : f32 to vector<2x512xf32>
    %94 = arith.addf %0, %93 : vector<2x512xf32>
    %95 = math.absf %94 : vector<2x512xf32>
    %96 = vector.broadcast %10 : f32 to vector<2x512xf32>
    %97 = arith.mulf %96, %95 : vector<2x512xf32>
    %98 = arith.addf %74, %97 : vector<2x512xf32>
    %99 = vector.broadcast %31 : f32 to vector<2x512xf32>
    %100 = arith.addf %0, %99 : vector<2x512xf32>
    %101 = math.absf %100 : vector<2x512xf32>
    %102 = vector.broadcast %11 : f32 to vector<2x512xf32>
    %103 = arith.mulf %102, %101 : vector<2x512xf32>
    %104 = arith.addf %80, %103 : vector<2x512xf32>
    %105 = vector.broadcast %32 : f32 to vector<2x512xf32>
    %106 = arith.addf %0, %105 : vector<2x512xf32>
    %107 = math.absf %106 : vector<2x512xf32>
    %108 = vector.broadcast %12 : f32 to vector<2x512xf32>
    %109 = arith.mulf %108, %107 : vector<2x512xf32>
    %110 = arith.addf %86, %109 : vector<2x512xf32>
    %111 = vector.broadcast %33 : f32 to vector<2x512xf32>
    %112 = arith.addf %0, %111 : vector<2x512xf32>
    %113 = math.absf %112 : vector<2x512xf32>
    %114 = vector.broadcast %13 : f32 to vector<2x512xf32>
    %115 = arith.mulf %114, %113 : vector<2x512xf32>
    %116 = arith.addf %92, %115 : vector<2x512xf32>
    %117 = vector.broadcast %34 : f32 to vector<2x512xf32>
    %118 = arith.addf %0, %117 : vector<2x512xf32>
    %119 = math.absf %118 : vector<2x512xf32>
    %120 = vector.broadcast %14 : f32 to vector<2x512xf32>
    %121 = arith.mulf %120, %119 : vector<2x512xf32>
    %122 = arith.addf %98, %121 : vector<2x512xf32>
    %123 = vector.broadcast %35 : f32 to vector<2x512xf32>
    %124 = arith.addf %0, %123 : vector<2x512xf32>
    %125 = math.absf %124 : vector<2x512xf32>
    %126 = vector.broadcast %15 : f32 to vector<2x512xf32>
    %127 = arith.mulf %126, %125 : vector<2x512xf32>
    %128 = arith.addf %104, %127 : vector<2x512xf32>
    %129 = vector.broadcast %36 : f32 to vector<2x512xf32>
    %130 = arith.addf %0, %129 : vector<2x512xf32>
    %131 = math.absf %130 : vector<2x512xf32>
    %132 = vector.broadcast %16 : f32 to vector<2x512xf32>
    %133 = arith.mulf %132, %131 : vector<2x512xf32>
    %134 = arith.addf %110, %133 : vector<2x512xf32>
    %135 = vector.broadcast %37 : f32 to vector<2x512xf32>
    %136 = arith.addf %0, %135 : vector<2x512xf32>
    %137 = math.absf %136 : vector<2x512xf32>
    %138 = vector.broadcast %17 : f32 to vector<2x512xf32>
    %139 = arith.mulf %138, %137 : vector<2x512xf32>
    %140 = arith.addf %116, %139 : vector<2x512xf32>
    %141 = vector.broadcast %38 : f32 to vector<2x512xf32>
    %142 = arith.addf %0, %141 : vector<2x512xf32>
    %143 = math.absf %142 : vector<2x512xf32>
    %144 = vector.broadcast %18 : f32 to vector<2x512xf32>
    %145 = arith.mulf %144, %143 : vector<2x512xf32>
    %146 = arith.addf %122, %145 : vector<2x512xf32>
    %147 = vector.broadcast %39 : f32 to vector<2x512xf32>
    %148 = arith.addf %0, %147 : vector<2x512xf32>
    %149 = math.absf %148 : vector<2x512xf32>
    %150 = vector.broadcast %19 : f32 to vector<2x512xf32>
    %151 = arith.mulf %150, %149 : vector<2x512xf32>
    %152 = arith.addf %128, %151 : vector<2x512xf32>
    %153 = vector.broadcast %40 : f32 to vector<2x512xf32>
    %154 = arith.addf %0, %153 : vector<2x512xf32>
    %155 = math.absf %154 : vector<2x512xf32>
    %156 = vector.broadcast %20 : f32 to vector<2x512xf32>
    %157 = arith.mulf %156, %155 : vector<2x512xf32>
    %158 = arith.addf %134, %157 : vector<2x512xf32>
    %159 = arith.addf %140, %146 : vector<2x512xf32>
    %160 = arith.addf %152, %158 : vector<2x512xf32>
    %161 = arith.addf %159, %160 : vector<2x512xf32>
    %162 = vector.broadcast %41 : f32 to vector<2x512xf32>
    %163 = arith.mulf %0, %162 : vector<2x512xf32>
    %164 = vector.broadcast %42 : f32 to vector<2x512xf32>
    %165 = arith.addf %163, %164 : vector<2x512xf32>
    %166 = arith.addf %161, %165 : vector<2x512xf32>
    %c0_24 = arith.constant 0 : index
    %c0_25 = arith.constant 0 : index
    %167 = vector.load %arg5[%c0_24, %c0_25] : memref<2x512xf32, #tpu.memory_space<vmem>>, vector<2x512xf32>
    tpu.vector_store %arg5[%c0_24, %c0_25], %166 {strides = array<i32>} : memref<2x512xf32, #tpu.memory_space<vmem>>, vector<2x512xf32>,
    return
  }
  func.func @transform_0(%arg0: i32) -> i32 {
    %c0_i32 = arith.constant 0 : i32
    %c0_i32_0 = arith.constant 0 : i32
    return %c0_i32 : i32
  }
  func.func @transform_1(%arg0: i32) -> i32 {
    %c0_i32 = arith.constant 0 : i32
    %c0_i32_0 = arith.constant 0 : i32
    return %c0_i32 : i32
  }
  func.func @transform_2(%arg0: i32) -> i32 {
    %c0_i32 = arith.constant 0 : i32
    %c0_i32_0 = arith.constant 0 : i32
    return %c0_i32 : i32
  }
  func.func @transform_3(%arg0: i32) -> (i32, i32) {
    %c0_i32 = arith.constant 0 : i32
    %c0_i32_0 = arith.constant 0 : i32
    return %arg0, %c0_i32 : i32, i32
  }
  func.func @transform_4(%arg0: i32) -> (i32, i32) {
    %c0_i32 = arith.constant 0 : i32
    %c0_i32_0 = arith.constant 0 : i32
    return %arg0, %c0_i32 : i32, i32
  }
}

</mosaic_0001>

<bundles_post_ra>
// kernel: tpu_custom_call.1
= control target key start
LH: loop header
LB: loop body
LE: loop exit
PB: predicated region body
PF: predicated region fallthrough
CT: control target
= control target key end

     0   :  { %9 = vsyncpa [#allocation5], 0  ;;  %s607_s0 = inlined_call_operand.hbm [shape: f32[20], index: 0, kind: input, shape index: {}]   ;;  %s608_s1 = inlined_call_operand.hbm [shape: f32[20], index: 1, kind: input, shape index: {}]   ;;  %s609_s2 = inlined_call_operand.vmem [shape: f32[2], index: 2, kind: input, shape index: {}]   ;;  %s610_s3 = inlined_call_operand.hbm [shape: f32[2,512], index: 3, kind: input, shape index: {}]   ;;  %s611_s4 = inlined_call_operand.hbm [shape: f32[2,512], index: 4, kind: output, shape index: {}]  }
   0x1   :  { %10 = vsyncpa [#allocation8], 0 }
   0x2   :  { %11 = vsyncpa [#allocation6], 0 }
   0x3   :  { %12 = vsyncpa [#allocation3], 0 }
   0x4   :  { %13 = vsyncpa [#allocation4], 0  ;;  %s19_s17 = sshll.u32 %s607_s0, 4  ;;  %s28_s20 = sshll.u32 %s608_s1, 4  ;;  %s20_s17 = int_to_ptr.hbm [resolvable:$true] %s19_s17  ;;  %s29_s20 = int_to_ptr.hbm [resolvable:$true] %s28_s20 }
   0x5   :  { %s395_s21 = smov [#allocation2]   ;;  %s396_s22 = smov [#allocation7]  }
   0x6   :  { %22 = dma.hbm_to_smem %s20_s17, 16, %s395_s21, [#allocation5]  }
   0x7   :  { %31 = dma.hbm_to_smem %s29_s20, 16, %s396_s22, [#allocation8]  }
   0x8   :  { %s37_s25 = sshll.u32 %s609_s2, 4  ;;  %s46_s28 = sshll.u32 %s610_s3, 4  ;;  %s38_s25 = int_to_ptr.vmem [resolvable:$true] %s37_s25  ;;  %s47_s28 = int_to_ptr.hbm [resolvable:$true] %s46_s28 }
   0x9   :  { %s397_s0 = smov [#allocation9]   ;;  %s398_s29 = smov [#allocation10]  }
   0xa   :  { %40 = dma.vmem_to_smem %s38_s25, 16, %s397_s0, [#allocation6]  }
   0xb   :  { %s48_s30 = sshll.u32 %s398_s29, 4  ;;  %s49_s30 = int_to_ptr.vmem [resolvable:$true] %s48_s30 }
   0xc   :  { %51 = dma.hbm_to_vmem [thread:$0]  %s47_s28, 128, %s49_s30, [#allocation3]  }
   0xd   :  { %385 = dma.done.wait [#allocation5], 16  }
   0xe   :  { %386 = vsyncadd [#allocation5], 4294967280 }
   0xf   :  { %387 = dma.done.wait [#allocation8], 16  }
  0x10   :  { %388 = vsyncadd [#allocation8], 4294967280 }
  0x11   :  { %389 = dma.done.wait [#allocation6], 16  }
  0x12   :  { %390 = vsyncadd [#allocation6], 4294967280 }
  0x13   :  { %391 = dma.done.wait [#allocation3], 128  }
  0x14   :  { %392 = vsyncadd [#allocation3], 4294967168 }
  0x15   :  { %68 = sfence }
  0x16   :  { %s437_s1 = sld [smem:[#allocation2]]  ;;  %v481_v2 = vld [vmem:[#allocation10] sm:$0xff] }
  0x17   :  { %s439_s2 = sld [smem:[#allocation2 + $0x1]] }
  0x18   :  { %s441_s3 = sld [smem:[#allocation2 + $0x2]] }
  0x19   :  { %s443_s5 = sld [smem:[#allocation2 + $0x3]] }
  0x1a   :  { %s445_s6 = sld [smem:[#allocation2 + $0x4]] }
  0x1b   :  { %s447_s7 = sld [smem:[#allocation2 + $0x5]] }
  0x1c   :  { %s449_s8 = sld [smem:[#allocation2 + $0x6]]  ;;  %v115_v0 = vstv %s437_s1 }
  0x1d   :  { %s451_s9 = sld [smem:[#allocation2 + $0x7]]  ;;  %v120_v1 = vstv %s439_s2 }
  0x1e   :  { %s453_s10 = sld [smem:[#allocation2 + $0x8]]  ;;  %v125_v3 = vstv %s441_s3 }
  0x1f   :  { %s455_s11 = sld [smem:[#allocation2 + $0x9]]  ;;  %v130_v4 = vstv %s443_s5 }
  0x20   :  { %s457_s12 = sld [smem:[#allocation2 + $0xa]]  ;;  %v135_v5 = vstv %s445_s6 }
  0x21   :  { %s459_s13 = sld [smem:[#allocation2 + $0xb]]  ;;  %v141_v6 = vstv %s447_s7 }
  0x22   :  { %s461_s14 = sld [smem:[#allocation2 + $0xc]]  ;;  %v147_v7 = vstv %s449_s8 }
  0x23   :  { %s463_s15 = sld [smem:[#allocation2 + $0xd]]  ;;  %v153_v8 = vstv %s451_s9 }
  0x24   :  { %s465_s16 = sld [smem:[#allocation2 + $0xe]]  ;;  %v159_v9 = vstv %s453_s10 }
  0x25   :  { %s467_s17 = sld [smem:[#allocation2 + $0xf]]  ;;  %v165_v10 = vstv %s455_s11 }
  0x26   :  { %s469_s18 = sld [smem:[#allocation2 + $0x10]]  ;;  %v171_v12 = vstv %s457_s12  ;;  %s399_s12 = smov [#allocation11]  }
  0x27   :  { %s471_s19 = sld [smem:[#allocation2 + $0x11]]  ;;  %v177_v13 = vstv %s459_s13  ;;  %s242_s13 = sshll.u32 %s399_s12, 4  ;;  %s243_s13 = int_to_ptr.vmem [resolvable:$true] %s242_s13 }
  0x28   :  { %s473_s20 = sld [smem:[#allocation2 + $0x12]]  ;;  %v183_v14 = vstv %s461_s14 }
  0x29   :  { %s90_s21 = sld [smem:[#allocation7]]  ;;  %v189_v17 = vstv %s463_s15 }
  0x2a   :  { %s276_s22 = sld [smem:[#allocation7 + $0x1]]  ;;  %v195_v18 = vstv %s465_s16  ;;  %s244_s16 = sshll.u32 %s611_s4, 4  ;;  %s245_s16 = int_to_ptr.hbm [resolvable:$true] %s244_s16 }
  0x2b   :  { %s475_s23 = sld [smem:[#allocation7 + $0x2]]  ;;  %v201_v21 = vstv %s467_s17 }
  0x2c   :  { %s477_s24 = sld [smem:[#allocation7 + $0x3]]  ;;  %v207_v22 = vstv %s469_s18 }
  0x2d   :  { %s483_s25 = sld [smem:[#allocation7 + $0x4]]  ;;  %v213_v26 = vstv %s471_s19 }
  0x2e   :  { %s489_s26 = sld [smem:[#allocation7 + $0x5]]  ;;  %v219_v30 = vstv %s473_s20 }
  0x2f   :  { %s495_s27 = sld [smem:[#allocation7 + $0x6]]  ;;  %v112_v11 = vstv %s90_s21 }
  0x30   :  { %s500_s28 = sld [smem:[#allocation7 + $0x7]]  ;;  %v113_v15 = vadd.f32 %v112_v11, %v481_v2  ;;  %v117_v16 = vstv %s276_s22 }
  0x31   :  { %s505_s0 = sld [smem:[#allocation7 + $0x8]]  ;;  %v118_v19 = vadd.f32 %v117_v16, %v481_v2  ;;  %v122_v20 = vstv %s475_s23 }
  0x32   :  { %s511_s29 = sld [smem:[#allocation7 + $0x9]]  ;;  %v114_v23 = vand.u32 2147483647, %v113_v15  ;;  %v123_v24 = vadd.f32 %v122_v20, %v481_v2  ;;  %v127_v25 = vstv %s477_s24 }
  0x33   :  { %s516_s30 = sld [smem:[#allocation7 + $0xa]]  ;;  %v119_v27 = vand.u32 2147483647, %v118_v19  ;;  %v128_v28 = vadd.f32 %v127_v25, %v481_v2  ;;  %v132_v29 = vstv %s483_s25 }
  0x34   :  { %s521_s1 = sld [smem:[#allocation7 + $0xb]]  ;;  %v116_v31 = vmul.f32 %v115_v0, %v114_v23  ;;  %v124_v32 = vand.u32 2147483647, %v123_v24  ;;  %v133_v33 = vadd.f32 %v132_v29, %v481_v2  ;;  %v138_v34 = vstv %s489_s26 }
  0x35   :  { %s525_s2 = sld [smem:[#allocation7 + $0xc]]  ;;  %v121_v35 = vmul.f32 %v120_v1, %v119_v27  ;;  %v129_v36 = vand.u32 2147483647, %v128_v28  ;;  %v139_v37 = vadd.f32 %v138_v34, %v481_v2  ;;  %v144_v38 = vstv %s495_s27 }
  0x36   :  { %s529_s3 = sld [smem:[#allocation7 + $0xd]]  ;;  %v126_v39 = vmul.f32 %v125_v3, %v124_v32  ;;  %v134_v40 = vand.u32 2147483647, %v133_v33  ;;  %v145_v41 = vadd.f32 %v144_v38, %v481_v2  ;;  %v150_v42 = vstv %s500_s28 }
  0x37   :  { %s533_s5 = sld [smem:[#allocation7 + $0xe]]  ;;  %v131_v43 = vmul.f32 %v130_v4, %v129_v36  ;;  %v140_v44 = vand.u32 2147483647, %v139_v37  ;;  %v151_v45 = vadd.f32 %v150_v42, %v481_v2  ;;  %v156_v46 = vstv %s505_s0 }
  0x38   :  { %s537_s6 = sld [smem:[#allocation7 + $0xf]]  ;;  %v136_v47 = vmul.f32 %v135_v5, %v134_v40  ;;  %v146_v48 = vand.u32 2147483647, %v145_v41  ;;  %v157_v49 = vadd.f32 %v156_v46, %v481_v2  ;;  %v162_v50 = vstv %s511_s29 }
  0x39   :  { %s541_s7 = sld [smem:[#allocation7 + $0x10]]  ;;  %v142_v51 = vmul.f32 %v141_v6, %v140_v44  ;;  %v152_v52 = vand.u32 2147483647, %v151_v45  ;;  %v163_v53 = vadd.f32 %v162_v50, %v481_v2  ;;  %v168_v54 = vstv %s516_s30 }
  0x3a   :  { %s545_s8 = sld [smem:[#allocation7 + $0x11]]  ;;  %v137_v55 = vadd.f32 %v136_v47, %v116_v31  ;;  %v148_v56 = vmul.f32 %v147_v7, %v146_v48  ;;  %v158_v57 = vand.u32 2147483647, %v157_v49  ;;  %v169_v58 = vadd.f32 %v168_v54, %v481_v2 }
  0x3b   :  { %s548_s21 = sld [smem:[#allocation7 + $0x12]]  ;;  %v143_v59 = vadd.f32 %v142_v51, %v121_v35  ;;  %v154_v60 = vmul.f32 %v153_v8, %v152_v52  ;;  %v164_v61 = vand.u32 2147483647, %v163_v53  ;;  %v174_v62 = vstv %s521_s1 }
  0x3c   :  { %v149_v63 = vadd.f32 %v148_v56, %v126_v39  ;;  %v160_v0 = vmul.f32 %v159_v9, %v158_v57  ;;  %v170_v1 = vand.u32 2147483647, %v169_v58  ;;  %v175_v3 = vadd.f32 %v174_v62, %v481_v2  ;;  %s556_s22 = sld [smem:[#allocation7 + $0x13]] }
  0x3d   :  { %v155_v4 = vadd.f32 %v154_v60, %v131_v43  ;;  %v166_v5 = vmul.f32 %v165_v10, %v164_v61  ;;  %v180_v6 = vstv %s525_s2  ;;  %v186_v7 = vstv %s529_s3  ;;  %s562_s9 = sld [smem:[#allocation2 + $0x13]] }
  0x3e   :  { %v161_v8 = vadd.f32 %v160_v0, %v137_v55  ;;  %v172_v9 = vmul.f32 %v171_v12, %v170_v1  ;;  %v176_v11 = vand.u32 2147483647, %v175_v3  ;;  %v181_v15 = vadd.f32 %v180_v6, %v481_v2  ;;  %s567_s10 = sld [smem:[#allocation9]] }
  0x3f   :  { %v167_v16 = vadd.f32 %v166_v5, %v143_v59  ;;  %v187_v19 = vadd.f32 %v186_v7, %v481_v2  ;;  %v192_v10 = vstv %s533_s5  ;;  %v198_v20 = vstv %s537_s6  ;;  %s581_s11 = sld [smem:[#allocation9 + $0x1]] }
  0x40   :  { %v173_v23 = vadd.f32 %v172_v9, %v149_v63  ;;  %v178_v24 = vmul.f32 %v177_v13, %v176_v11  ;;  %v182_v25 = vand.u32 2147483647, %v181_v15  ;;  %v193_v12 = vadd.f32 %v192_v10, %v481_v2 }
  0x41   :  { %v188_v27 = vand.u32 2147483647, %v187_v19  ;;  %v199_v28 = vadd.f32 %v198_v20, %v481_v2  ;;  %v204_v29 = vstv %s541_s7  ;;  %v210_v31 = vstv %s545_s8 }
  0x42   :  { %v179_v32 = vadd.f32 %v178_v24, %v155_v4  ;;  %v184_v33 = vmul.f32 %v183_v14, %v182_v25  ;;  %v194_v34 = vand.u32 2147483647, %v193_v12  ;;  %v205_v35 = vadd.f32 %v204_v29, %v481_v2 }
  0x43   :  { %v190_v13 = vmul.f32 %v189_v17, %v188_v27  ;;  %v200_v36 = vand.u32 2147483647, %v199_v28  ;;  %v211_v37 = vadd.f32 %v210_v31, %v481_v2  ;;  %v216_v38 = vstv %s548_s21 }
  0x44   :  { %v185_v39 = vadd.f32 %v184_v33, %v161_v8  ;;  %v196_v40 = vmul.f32 %v195_v18, %v194_v34  ;;  %v206_v14 = vand.u32 2147483647, %v205_v35  ;;  %v217_v41 = vadd.f32 %v216_v38, %v481_v2 }
  0x45   :  { %v191_v42 = vadd.f32 %v190_v13, %v167_v16  ;;  %v202_v43 = vmul.f32 %v201_v21, %v200_v36  ;;  %v212_v44 = vand.u32 2147483647, %v211_v37  ;;  %v222_v45 = vstv %s556_s22 }
  0x46   :  { %v197_v17 = vadd.f32 %v196_v40, %v173_v23  ;;  %v208_v46 = vmul.f32 %v207_v22, %v206_v14  ;;  %v218_v47 = vand.u32 2147483647, %v217_v41  ;;  %v223_v48 = vadd.f32 %v222_v45, %v481_v2 }
  0x47   :  { %v214_v49 = vmul.f32 %v213_v26, %v212_v44  ;;  %v225_v50 = vstv %s562_s9  ;;  %v231_v18 = vstv %s567_s10  ;;  %v203_v51 = vadd.f32 %v202_v43, %v179_v32 }
  0x48   :  { %v209_v52 = vadd.f32 %v208_v46, %v185_v39  ;;  %v220_v53 = vmul.f32 %v219_v30, %v218_v47  ;;  %v224_v54 = vand.u32 2147483647, %v223_v48  ;;  %v232_v57 = vmul.f32 %v231_v18, %v481_v2 }
  0x49   :  { %v215_v55 = vadd.f32 %v214_v49, %v191_v42  ;;  %v233_v58 = vstv %s581_s11 }
  0x4a   :  { %v221_v21 = vadd.f32 %v220_v53, %v197_v17  ;;  %v226_v56 = vmul.f32 %v225_v50, %v224_v54  ;;  %v234_v61 = vadd.f32 %v233_v58, %v232_v57 }
  0x4b   :  { %v228_v22 = vadd.f32 %v215_v55, %v209_v52 }
  0x4c   :  { %v227_v59 = vadd.f32 %v226_v56, %v203_v51 }
  0x4e   :  { %v229_v60 = vadd.f32 %v227_v59, %v221_v21 }
  0x50   :  { %v230_v26 = vadd.f32 %v229_v60, %v228_v22 }
  0x52   :  { %v235_v62 = vadd.f32 %v234_v61, %v230_v26 }
  0x54   :  { %236 = vst [vmem:[#allocation11] sm:$0xff] %v235_v62 }
  0x55   :  { %247 = dma.vmem_to_hbm [thread:$0]  %s243_s13, 128, %s245_s16, [#allocation4]  }
  0x56   :  { %393 = dma.done.wait [#allocation4], 128  }
  0x57   :  { %394 = vsyncadd [#allocation4], 4294967168 }
  0x58   :  { %252 = vsyncpa [#allocation3], 1 }
  0x59   :  { %253 = vsyncpa [#allocation4], 1 }
  0x5a   :  { %254 = vsyncpa [#allocation5], 1 }
  0x5b   :  { %255 = vsyncpa [#allocation8], 1 }
  0x5c   :  { %256 = vsyncpa [#allocation6], 1 }

</bundles_post_ra>
